<compile_context>
chip_gen: v7x
topology: tpu7x:2x2x1
jax: 0.10.0
libtpu: 0.0.40
codegen_flags: <defaults>
</compile_context>

<pallas_src>
import math

import jax
import jax.numpy as jnp
from jax.experimental import pallas as pl
from jax.experimental.pallas import tpu as pltpu


_PALLAS_MIN_ELEMENTS = 1 << 20   # below ~1M elems, a plain fused XLA add wins
_LANES = 128
_SUBLANES = 8

_CHIP_CONFIG = None


def _chip_config():
    """Chip-gated tile budget (bytes per x-stream tile) and scoped-VMEM limit."""
    global _CHIP_CONFIG
    if _CHIP_CONFIG is None:
        tile_bytes, vmem_limit = 2 * 1024 * 1024, None   # safe on v5e/v6e
        try:
            vmem = pltpu.get_tpu_info().vmem_capacity_bytes
            if vmem <= 96 * 1024 * 1024:
                # v7x: 64 MiB physical VMEM/TC, ~3.2 TB/s HBM -> bigger tiles
                # keep the ~0.35 us per-step pipeline overhead below ~10%.
                tile_bytes, vmem_limit = 4 * 1024 * 1024, 40 * 1024 * 1024
        except Exception:
            pass   # conservative defaults fit every generation's scoped VMEM
        _CHIP_CONFIG = {"tile_bytes": tile_bytes, "vmem_limit": vmem_limit}
    return _CHIP_CONFIG


def _compiler_params(dimension_semantics, vmem_limit):
    kw = dict(dimension_semantics=dimension_semantics)
    if vmem_limit is not None:
        kw["vmem_limit_bytes"] = vmem_limit
    return pltpu.CompilerParams(**kw)


def make_positional_encoding(d_model: int, max_len: int = 5000,
                             dtype=jnp.float32) -> jnp.ndarray:
    """Builds the pe buffer exactly like the PyTorch __init__ (batch_first=True)."""
    position = jnp.arange(max_len, dtype=jnp.float32)[:, None]            # [max_len, 1]
    div_term = jnp.exp(
        jnp.arange(0, d_model, 2, dtype=jnp.float32) * (-math.log(10000.0) / d_model)
    )                                                                     # [d_model/2]
    angles = position * div_term                                          # [max_len, d_model/2]
    pe = jnp.zeros((max_len, d_model), dtype=jnp.float32)
    pe = pe.at[:, 0::2].set(jnp.sin(angles))
    pe = pe.at[:, 1::2].set(jnp.cos(angles))
    return pe[None, :, :].astype(dtype)                                   # [1, max_len, d_model]


def _flatten_lane_dense(pe: jnp.ndarray) -> jnp.ndarray:
    """One-time: flatten pe row-major and zero-pad to a multiple of 8*128 lanes.

    The first S*d_model flat elements of this buffer are exactly
    pe[:, :S, :] flattened, for any S, so the kernel never needs a per-call
    slice or cast of pe.
    """
    flat = pe.reshape(-1)
    n = flat.shape[0]
    granule = _SUBLANES * _LANES
    padded = ((n + granule - 1) // granule) * granule
    if padded != n:
        flat = jnp.pad(flat, (0, padded - n))
    return flat.reshape(1, padded // _LANES, _LANES)


def _tile_rows(total_rows: int, row_bytes: int, target_bytes: int) -> int:
    """Largest row tile (multiple of 8 sublanes) under the per-stream budget."""
    budget_rows = max(1, target_bytes // max(row_bytes, 1))
    rows = max(_SUBLANES, (budget_rows // _SUBLANES) * _SUBLANES)
    total_aligned = ((total_rows + _SUBLANES - 1) // _SUBLANES) * _SUBLANES
    return min(rows, total_aligned)


def _add_pe_kernel(x_ref, pe_ref, o_ref):
    # Pure elementwise add; pe block broadcasts over the (folded) batch dim.
    o_ref[...] = (x_ref[...] + pe_ref[...]).astype(o_ref.dtype)


def _run_add_folded(x3: jnp.ndarray, pe_flat: jnp.ndarray,
                    tile_rows: int, vmem_limit) -> jnp.ndarray:
    """Small/moderate B: batch folded into the block, 1-D grid over row tiles."""
    B, R, C = x3.shape
    grid = (pl.cdiv(R, tile_rows),)
    return pl.pallas_call(
        _add_pe_kernel,
        out_shape=jax.ShapeDtypeStruct((B, R, C), x3.dtype),
        grid_spec=pltpu.PrefetchScalarGridSpec(
            num_scalar_prefetch=0,
            grid=grid,
            in_specs=[
                pl.BlockSpec((B, tile_rows, C), lambda r: (0, r, 0)),   # x (all batches)
                pl.BlockSpec((1, tile_rows, C), lambda r: (0, r, 0)),   # pe (read once/tile)
            ],
            out_specs=pl.BlockSpec((B, tile_rows, C), lambda r: (0, r, 0)),
        ),
        compiler_params=_compiler_params(("parallel",), vmem_limit),
    )(x3, pe_flat)


def _run_add_batched(x3: jnp.ndarray, pe_flat: jnp.ndarray,
                     tile_rows: int, vmem_limit) -> jnp.ndarray:
    """Large B: (rows, batch) grid, batch innermost + sequential so the pe block
    index stays constant across batch (pe fetched once per row tile); megacore
    splits the row axis only, preserving that reuse."""
    B, R, C = x3.shape
    grid = (pl.cdiv(R, tile_rows), B)
    return pl.pallas_call(
        _add_pe_kernel,
        out_shape=jax.ShapeDtypeStruct((B, R, C), x3.dtype),
        grid_spec=pltpu.PrefetchScalarGridSpec(
            num_scalar_prefetch=0,
            grid=grid,
            in_specs=[
                pl.BlockSpec((1, tile_rows, C), lambda r, b: (b, r, 0)),   # x
                pl.BlockSpec((1, tile_rows, C), lambda r, b: (0, r, 0)),   # pe (broadcast)
            ],
            out_specs=pl.BlockSpec((1, tile_rows, C), lambda r, b: (b, r, 0)),
        ),
        compiler_params=_compiler_params(("parallel", "arbitrary"), vmem_limit),
    )(x3, pe_flat)


def positional_encoding_forward(x: jnp.ndarray, pe: jnp.ndarray,
                                pe_flat: jnp.ndarray,
                                *, force_pallas: bool = False) -> jnp.ndarray:
    """x: [B, S, D] (batch_first). pe: [1, max_len, D] (compute dtype).
    pe_flat: lane-dense (1, R_full, 128) view of pe from _flatten_lane_dense."""
    B, S, D = x.shape
    assert pe.shape[1] >= S, "sequence length exceeds max_len"
    N = S * D

    # Tiny shapes: custom-call launch + pipeline prologue dominate; let XLA fuse.
    if not force_pallas and x.size < _PALLAS_MIN_ELEMENTS:
        return x + pe[:, :S, :]

    cfg = _chip_config()
    itemsize = jnp.dtype(x.dtype).itemsize

    # Lane-dense view of x: rows of 128 lanes.  Only the ragged case pays a pad.
    pad = (-N) % _LANES
    R = (N + pad) // _LANES
    xf = x.reshape(B, N)
    if pad:
        xf = jnp.pad(xf, ((0, 0), (0, pad)))
    x3 = xf.reshape(B, R, _LANES)

    x_row_bytes_folded = B * _LANES * itemsize
    if x_row_bytes_folded * _SUBLANES <= cfg["tile_bytes"]:
        # Batch fits the per-stream tile budget -> fold it into the block.
        tr = _tile_rows(R, x_row_bytes_folded, cfg["tile_bytes"])
        out = _run_add_folded(x3, pe_flat, tr, cfg["vmem_limit"])
    else:
        tr = _tile_rows(R, _LANES * itemsize, cfg["tile_bytes"])
        out = _run_add_batched(x3, pe_flat, tr, cfg["vmem_limit"])

    if pad:
        out = out.reshape(B, R * _LANES)[:, :N]
    return out.reshape(B, S, D)


class PositionalEncoding:
    """JAX/Pallas port of the PyTorch module (batch_first=True, eval-mode dropout)."""

    def __init__(self, d_model: int, dropout: float = 0.1, max_len: int = 5000,
                 dtype=jnp.float32):
        self.d_model = d_model
        self.dropout_p = dropout            # TODO(synk): training-mode dropout not applied
        self.pe = make_positional_encoding(d_model, max_len, dtype)   # (1, max_len, d)
        self.pe_flat = _flatten_lane_dense(self.pe)                   # (1, R_full, 128)

    def __call__(self, x: jnp.ndarray, *, force_pallas: bool = False) -> jnp.ndarray:
        return positional_encoding_forward(x, self.pe, self.pe_flat,
                                           force_pallas=force_pallas)


if __name__ == "__main__":
    key = jax.random.PRNGKey(0)
    k1, k2 = jax.random.split(key)

    # Primary demo (lane-dense, no padding: S*D = 256): batch=2, seq=8, d_model=32.
    B, S, D = 2, 8, 32
    x = jax.random.normal(k1, (B, S, D), dtype=jnp.float32)
    mod = PositionalEncoding(d_model=D, max_len=64)
    ref = x + mod.pe[:, :S, :]

    out = jax.block_until_ready(jax.jit(lambda v: mod(v, force_pallas=True))(x))
    assert out.shape == (B, S, D)
    assert jnp.allclose(out, ref, atol=1e-6), "mismatch vs reference (lane-dense path)"

    # Secondary check: S*D = 160, not a multiple of 128 -> padded lane-dense path.
    B2, S2, D2 = 2, 8, 20
    x2 = jax.random.normal(k2, (B2, S2, D2), dtype=jnp.float32)
    mod2 = PositionalEncoding(d_model=D2, max_len=64)
    ref2 = x2 + mod2.pe[:, :S2, :]

    out2 = jax.block_until_ready(jax.jit(lambda v: mod2(v, force_pallas=True))(x2))
    assert out2.shape == (B2, S2, D2)
    assert jnp.allclose(out2, ref2, atol=1e-6), "mismatch vs reference (padded path)"

    print("KERNEL_OK")
</pallas_src>

<mosaic_0001>
module attributes {stable_mosaic.version = 11 : i64} {
  func.func @_add_pe_kernel(%arg0: i32, %arg1: memref<2x8x128xf32, #tpu.memory_space<vmem>>, %arg2: memref<1x8x128xf32, #tpu.memory_space<vmem>>, %arg3: memref<2x8x128xf32, #tpu.memory_space<vmem>>) attributes {dimension_semantics = [#tpu.dimension_semantics<parallel>], iteration_bounds = array<i64: 1>, scalar_prefetch = 0 : i64, scratch_operands = 0 : i64, tpu.core_type = #tpu.core_type<tc>, window_params = [{transform_indices = @transform_0, window_bounds = array<i64: 2, 8, 128>}, {transform_indices = @transform_1, window_bounds = array<i64: 1, 8, 128>}, {transform_indices = @transform_2, window_bounds = array<i64: 2, 8, 128>}]} {
    %c0 = arith.constant 0 : index
    %c0_0 = arith.constant 0 : index
    %c0_1 = arith.constant 0 : index
    %0 = vector.load %arg1[%c0, %c0_0, %c0_1] : memref<2x8x128xf32, #tpu.memory_space<vmem>>, vector<2x8x128xf32>
    %c0_2 = arith.constant 0 : index
    %c0_3 = arith.constant 0 : index
    %c0_4 = arith.constant 0 : index
    %1 = vector.load %arg2[%c0_2, %c0_3, %c0_4] : memref<1x8x128xf32, #tpu.memory_space<vmem>>, vector<1x8x128xf32>
    %2 = vector.broadcast %1 : vector<1x8x128xf32> to vector<2x8x128xf32>
    %3 = arith.addf %0, %2 : vector<2x8x128xf32>
    %c0_5 = arith.constant 0 : index
    %c0_6 = arith.constant 0 : index
    %c0_7 = arith.constant 0 : index
    %4 = vector.load %arg3[%c0_5, %c0_6, %c0_7] : memref<2x8x128xf32, #tpu.memory_space<vmem>>, vector<2x8x128xf32>
    tpu.vector_store %arg3[%c0_5, %c0_6, %c0_7], %3 {strides = array<i32>} : memref<2x8x128xf32, #tpu.memory_space<vmem>>, vector<2x8x128xf32>,
    return
  }
  func.func @transform_0(%arg0: i32) -> (i32, i32, i32) {
    %c0_i32 = arith.constant 0 : i32
    %c0_i32_0 = arith.constant 0 : i32
    %c0_i32_1 = arith.constant 0 : i32
    return %c0_i32, %arg0, %c0_i32_0 : i32, i32, i32
  }
  func.func @transform_1(%arg0: i32) -> (i32, i32, i32) {
    %c0_i32 = arith.constant 0 : i32
    %c0_i32_0 = arith.constant 0 : i32
    %c0_i32_1 = arith.constant 0 : i32
    return %c0_i32, %arg0, %c0_i32_0 : i32, i32, i32
  }
  func.func @transform_2(%arg0: i32) -> (i32, i32, i32) {
    %c0_i32 = arith.constant 0 : i32
    %c0_i32_0 = arith.constant 0 : i32
    %c0_i32_1 = arith.constant 0 : i32
    return %c0_i32, %arg0, %c0_i32_0 : i32, i32, i32
  }
}

</mosaic_0001>

<bundles_post_ra>
// kernel: _lambda_.1
= control target key start
LH: loop header
LB: loop body
LE: loop exit
PB: predicated region body
PF: predicated region fallthrough
CT: control target
= control target key end

     0   :  { %s132_s0 = inlined_call_operand.vmem [shape: f32[2,2,128], index: 0, kind: input, shape index: {}]   ;;  %s133_s1 = inlined_call_operand.vmem [shape: f32[1,16,128], index: 1, kind: input, shape index: {}]   ;;  %s134_s2 = inlined_call_operand.vmem [shape: f32[2,2,128], index: 2, kind: output, shape index: {}]  }
   0x1   :  { %v24_v0 = vld [vmem:[%s132_s0] sm:$0x3]  ;;  %v26_v1 = vld [vmem:[%s132_s0 + $0x2] sm:$0x3] }
   0x2   :  { %25 = vst [vmem:[#allocation2] sm:$0x3] %v24_v0  ;;  %27 = vst [vmem:[#allocation2 + $0x8] sm:$0x3] %v26_v1  ;;  %v50_v2 = vld [vmem:[%s133_s1] sm:$0xff] }
   0x9   :  { %v48_v3 = vld [vmem:[#allocation2] sm:$0xff]  ;;  %v49_v4 = vld [vmem:[#allocation2 + $0x8] sm:$0xff] }
   0xa   :  { %v51_v5 = vadd.f32 %v50_v2, %v48_v3  ;;  %v52_v6 = vadd.f32 %v50_v2, %v49_v4 }
   0xc   :  { %53 = vst [vmem:[#allocation3] sm:$0xff] %v51_v5  ;;  %54 = vst [vmem:[#allocation3 + $0x8] sm:$0xff] %v52_v6 }
  0x13   :  { %v72_v7 = vld [vmem:[#allocation3] sm:$0x3]  ;;  %v74_v8 = vld [vmem:[#allocation3 + $0x8] sm:$0x3] }
  0x14   :  { %73 = vst [vmem:[%s134_s2] sm:$0x3] %v72_v7  ;;  %75 = vst [vmem:[%s134_s2 + $0x2] sm:$0x3] %v74_v8 }

</bundles_post_ra>
